<compile_context>
chip_gen: v7x
topology: tpu7x:2x2x1
jax: 0.10.0
libtpu: 0.0.40
codegen_flags: <defaults>
</compile_context>

<pallas_src>
import math
import functools

import jax
import jax.numpy as jnp
from jax.experimental import pallas as pl
from jax.experimental.pallas import tpu as pltpu


_SQRT_2_OVER_PI = math.sqrt(2.0 / math.pi)


def _gelu_new(x):
    # HF "gelu_new": 0.5 * x * (1 + tanh(sqrt(2/pi) * (x + 0.044715 * x^3)))
    return 0.5 * x * (1.0 + jnp.tanh(_SQRT_2_OVER_PI * (x + 0.044715 * x * x * x)))


def _round_up(n, m):
    return ((n + m - 1) // m) * m


def _vmem_capacity_bytes():
    """Physical per-core VMEM; conservative 64 MiB fallback if query fails."""
    try:
        info = pltpu.get_tpu_info()
        cap = getattr(info, "vmem_capacity_bytes", None)
        if cap:
            return int(cap)
    except Exception:
        pass
    return 64 << 20


def _vmem_footprint(tm, tf, D, io_bytes, w_bytes, gated):
    """Estimated VMEM bytes for one (tm, tf) tile choice (double-buffered I/O)."""
    wi_cols = 2 * tf if gated else tf
    wi_block = D * wi_cols * w_bytes * 2          # first-GEMM weight tile, x2 buffers
    wo_block = tf * D * w_bytes * 2               # wo tile, x2 buffers
    x_block = tm * D * io_bytes * 2               # input block, x2 buffers
    out_block = tm * D * io_bytes * 2             # output block, x2 buffers
    ln_block = D * 4 * 2                          # LN weight
    scratch = tm * D * (w_bytes + 4)              # xn (matmul dtype) + f32 accumulator
    return wi_block + wo_block + x_block + out_block + ln_block + scratch


def _pick_tf(F, vmem_cap):
    """F tile: 512 on 128-MiB parts, 256 on 64-MiB (v7x); multiple of 128.
    F is zero-padded to a multiple of the tile by prepare_t5_ff_params, so no
    divisibility fallback to tf=F is ever needed."""
    if F <= 128:
        return F
    target = 512 if vmem_cap >= (96 << 20) else 256
    return max(128, min(target, (F // 128) * 128))


def _pick_tm(N, D, tf, io_bytes, w_bytes, gated, vmem_budget):
    """Largest token tile (multiple of 8, <= padded N) that fits the VMEM budget."""
    n8 = _round_up(max(N, 1), 8)
    candidates = [1024, 896, 768, 640, 512, 384, 256, 192, 128, 64, 32, 16, 8]
    if N >= 512:
        # keep at least two token tiles so both v7x TensorCores get work
        half = _round_up(-(-N // 2), 128)
        candidates = [min(c, half) for c in candidates]
    best = 8
    for tm in candidates:
        tm = max(8, (min(tm, n8) // 8) * 8)
        if _vmem_footprint(tm, tf, D, io_bytes, w_bytes, gated) <= vmem_budget:
            best = tm
            break
    return best


# ---------------------------------------------------------------------------
# One-time weight preparation (hoisted out of the forward path).
# ---------------------------------------------------------------------------
def prepare_t5_ff_params(params, *, feed_forward_proj="gated-gelu",
                         matmul_dtype=jnp.bfloat16, tf=None):
    """Cast + repack weights once (per checkpoint / per matmul_dtype / tf)."""
    ln_w = params["layer_norm_weight"].astype(jnp.float32).reshape(1, -1)
    D = ln_w.shape[1]
    vmem_cap = _vmem_capacity_bytes()

    if feed_forward_proj == "gated-gelu":
        wi0, wi1, wo = params["wi_0"], params["wi_1"], params["wo"]
        F = wi0.shape[1]
        tf_eff = tf if tf is not None else _pick_tf(F, vmem_cap)
        F_pad = _round_up(F, tf_eff)
        nf = F_pad // tf_eff
        if F_pad != F:
            pad = F_pad - F
            wi0 = jnp.pad(wi0, ((0, 0), (0, pad)))
            wi1 = jnp.pad(wi1, ((0, 0), (0, pad)))
            wo = jnp.pad(wo, ((0, pad), (0, 0)))
        # Pack wi_0 / wi_1 per F-tile into one contiguous slab: (nf, D, 2*tf)
        wi0_t = wi0.astype(matmul_dtype).reshape(D, nf, tf_eff).transpose(1, 0, 2)
        wi1_t = wi1.astype(matmul_dtype).reshape(D, nf, tf_eff).transpose(1, 0, 2)
        wi01 = jnp.concatenate([wi0_t, wi1_t], axis=-1)
        return {
            "kind": "gated-gelu", "ln_w": ln_w,
            "wi01": wi01, "wo": wo.astype(matmul_dtype),       # (F_pad, D)
            "D": D, "F": F, "F_pad": F_pad, "tf": tf_eff,
            "matmul_dtype": matmul_dtype,
        }
    elif feed_forward_proj == "relu":
        wi, wo = params["wi"], params["wo"]
        F = wi.shape[1]
        tf_eff = tf if tf is not None else _pick_tf(F, vmem_cap)
        F_pad = _round_up(F, tf_eff)
        nf = F_pad // tf_eff
        if F_pad != F:
            pad = F_pad - F
            wi = jnp.pad(wi, ((0, 0), (0, pad)))
            wo = jnp.pad(wo, ((0, pad), (0, 0)))
        # Contiguous per-F-tile slabs (nf, D, tf), same as the gated path.
        wi_t = wi.astype(matmul_dtype).reshape(D, nf, tf_eff).transpose(1, 0, 2)
        return {
            "kind": "relu", "ln_w": ln_w,
            "wi": wi_t, "wo": wo.astype(matmul_dtype),         # (F_pad, D)
            "D": D, "F": F, "F_pad": F_pad, "tf": tf_eff,
            "matmul_dtype": matmul_dtype,
        }
    else:
        raise ValueError(f"{feed_forward_proj} is not supported. "
                         "Choose between `relu` and `gated-gelu`")


# ---------------------------------------------------------------------------
# Kernels
# ---------------------------------------------------------------------------
def _t5_ff_gated_gelu_kernel(eps, x_ref, lnw_ref, wi01_ref, wo_ref, o_ref,
                             xn_ref, acc_ref):
    j = pl.program_id(1)
    tf = wo_ref.shape[0]

    @pl.when(j == 0)
    def _init():
        x = x_ref[...].astype(jnp.float32)                        # [tm, D]
        # --- T5LayerNorm (RMS norm, no mean subtraction, no bias), f32 ---
        var = jnp.mean(x * x, axis=-1, keepdims=True)
        xn = lnw_ref[...].astype(jnp.float32) * (x * jax.lax.rsqrt(var + eps))
        xn_ref[...] = xn.astype(xn_ref.dtype)                     # bf16 for MXU
        acc_ref[...] = x                                          # residual folded in

    # One fused GEMM for the packed [wi_0 | wi_1] tile: [tm, D] @ [D, 2*tf]
    h01 = jnp.dot(xn_ref[...], wi01_ref[0],
                  preferred_element_type=jnp.float32)             # [tm, 2*tf] f32
    h = (_gelu_new(h01[:, :tf]) * h01[:, tf:]).astype(wo_ref.dtype)
    acc_ref[...] += jnp.dot(h, wo_ref[...],
                            preferred_element_type=jnp.float32)   # [tm, D] f32

    @pl.when(j == pl.num_programs(1) - 1)
    def _finalize():
        # residual already in the accumulator (dropout is identity in eval)
        o_ref[...] = acc_ref[...].astype(o_ref.dtype)


def _t5_ff_relu_kernel(eps, x_ref, lnw_ref, wi_ref, wo_ref, o_ref,
                       xn_ref, acc_ref):
    j = pl.program_id(1)

    @pl.when(j == 0)
    def _init():
        x = x_ref[...].astype(jnp.float32)
        var = jnp.mean(x * x, axis=-1, keepdims=True)
        xn = lnw_ref[...].astype(jnp.float32) * (x * jax.lax.rsqrt(var + eps))
        xn_ref[...] = xn.astype(xn_ref.dtype)
        acc_ref[...] = x

    h = jnp.dot(xn_ref[...], wi_ref[0],
                preferred_element_type=jnp.float32)               # [tm, tf] f32
    h = jnp.maximum(h, 0.0).astype(wo_ref.dtype)
    acc_ref[...] += jnp.dot(h, wo_ref[...],
                            preferred_element_type=jnp.float32)

    @pl.when(j == pl.num_programs(1) - 1)
    def _finalize():
        o_ref[...] = acc_ref[...].astype(o_ref.dtype)


# ---------------------------------------------------------------------------
# Forward wrapper (expects prepared params -- cheap per call).
# ---------------------------------------------------------------------------
def t5_layer_ff_prepared(hidden_states, prepared, *, layer_norm_epsilon=1e-6,
                         tm=None):
    """hidden_states: [B, S, D].  prepared: output of prepare_t5_ff_params."""
    B, S, D = hidden_states.shape
    assert D == prepared["D"], "d_model mismatch between activations and weights"
    N = B * S
    x = hidden_states.reshape(N, D)

    matmul_dtype = prepared["matmul_dtype"]
    io_bytes = jnp.dtype(hidden_states.dtype).itemsize
    w_bytes = jnp.dtype(matmul_dtype).itemsize
    tf = prepared["tf"]
    F_pad = prepared["F_pad"]
    nf = F_pad // tf
    gated = prepared["kind"] == "gated-gelu"

    vmem_cap = _vmem_capacity_bytes()
    vmem_budget = int(vmem_cap * 0.80)            # headroom for compiler scratch

    tm_eff = tm if tm is not None else _pick_tm(N, D, tf, io_bytes, w_bytes,
                                                gated, vmem_budget)
    tm_eff = max(8, (min(tm_eff, _round_up(N, 8)) // 8) * 8)
    n_pad = _round_up(N, tm_eff)
    if n_pad != N:
        x = jnp.pad(x, ((0, n_pad - N), (0, 0)))
    grid_m = n_pad // tm_eff

    if gated:
        kernel = functools.partial(_t5_ff_gated_gelu_kernel, layer_norm_epsilon)
        in_specs = [
            pl.BlockSpec((tm_eff, D), lambda i, j: (i, 0)),
            pl.BlockSpec((1, D), lambda i, j: (0, 0)),
            pl.BlockSpec((1, D, 2 * tf), lambda i, j: (j, 0, 0)),
            pl.BlockSpec((tf, D), lambda i, j: (j, 0)),
        ]
        args = (x, prepared["ln_w"], prepared["wi01"], prepared["wo"])
        flops = 6 * n_pad * D * F_pad
        transcendentals = n_pad * F_pad
        weight_bytes_total = 3 * D * F_pad * w_bytes * grid_m
    else:
        kernel = functools.partial(_t5_ff_relu_kernel, layer_norm_epsilon)
        in_specs = [
            pl.BlockSpec((tm_eff, D), lambda i, j: (i, 0)),
            pl.BlockSpec((1, D), lambda i, j: (0, 0)),
            pl.BlockSpec((1, D, tf), lambda i, j: (j, 0, 0)),
            pl.BlockSpec((tf, D), lambda i, j: (j, 0)),
        ]
        args = (x, prepared["ln_w"], prepared["wi"], prepared["wo"])
        flops = 4 * n_pad * D * F_pad
        transcendentals = 0
        weight_bytes_total = 2 * D * F_pad * w_bytes * grid_m

    vmem_bytes = _vmem_footprint(tm_eff, tf, D, io_bytes, w_bytes, gated)
    hard_cap = vmem_cap - (4 << 20)               # never exceed physical VMEM
    vmem_limit = min(int(vmem_bytes * 1.25) + (2 << 20), hard_cap)
    vmem_limit = max(vmem_limit, min(32 << 20, hard_cap))

    cost = pl.CostEstimate(
        flops=int(flops),
        transcendentals=int(transcendentals),
        bytes_accessed=int(n_pad * D * io_bytes * 2 + weight_bytes_total + D * 4),
    )

    out = pl.pallas_call(
        kernel,
        out_shape=jax.ShapeDtypeStruct((n_pad, D), hidden_states.dtype),
        grid_spec=pltpu.PrefetchScalarGridSpec(
            num_scalar_prefetch=0,
            grid=(grid_m, nf),
            in_specs=in_specs,
            out_specs=pl.BlockSpec((tm_eff, D), lambda i, j: (i, 0)),
            scratch_shapes=[
                pltpu.VMEM((tm_eff, D), matmul_dtype),   # normalized activations
                pltpu.VMEM((tm_eff, D), jnp.float32),    # f32 accumulator (+ residual)
            ],
        ),
        compiler_params=pltpu.CompilerParams(
            dimension_semantics=("parallel", "arbitrary"),
            vmem_limit_bytes=vmem_limit,
        ),
        cost_estimate=cost,
    )(*args)

    return out[:N].reshape(B, S, D)


def t5_layer_ff(hidden_states, params, *, feed_forward_proj="gated-gelu",
                layer_norm_epsilon=1e-6, matmul_dtype=jnp.bfloat16, tm=None,
                tf=None):
    """Convenience entry point (repacks weights on every call).
    For repeated calls, hoist prepare_t5_ff_params() out and call
    t5_layer_ff_prepared() directly."""
    prepared = prepare_t5_ff_params(params, feed_forward_proj=feed_forward_proj,
                                    matmul_dtype=matmul_dtype, tf=tf)
    return t5_layer_ff_prepared(hidden_states, prepared,
                                layer_norm_epsilon=layer_norm_epsilon, tm=tm)


# ---------------------------------------------------------------------------
# Pure-JAX reference (mirrors the PyTorch forward in eval mode).
# matmul_dtype=float32 -> exact module semantics; bfloat16 -> mirrors kernel.
# ---------------------------------------------------------------------------
def _ref_t5_layer_ff(x, params, *, feed_forward_proj="gated-gelu", eps=1e-6,
                     matmul_dtype=jnp.float32):
    xf = x.astype(jnp.float32)
    var = jnp.mean(xf * xf, axis=-1, keepdims=True)
    xn = xf * jax.lax.rsqrt(var + eps) * params["layer_norm_weight"].astype(jnp.float32)
    xn = xn.astype(matmul_dtype)
    if feed_forward_proj == "gated-gelu":
        hg = jnp.dot(xn, params["wi_0"].astype(matmul_dtype),
                     preferred_element_type=jnp.float32)
        hl = jnp.dot(xn, params["wi_1"].astype(matmul_dtype),
                     preferred_element_type=jnp.float32)
        h = (_gelu_new(hg) * hl).astype(matmul_dtype)
    else:
        h = jnp.dot(xn, params["wi"].astype(matmul_dtype),
                    preferred_element_type=jnp.float32)
        h = jnp.maximum(h, 0.0).astype(matmul_dtype)
    ff = jnp.dot(h, params["wo"].astype(matmul_dtype),
                 preferred_element_type=jnp.float32)
    return (xf + ff).astype(x.dtype)


def _xavier_normal(key, fan_out, fan_in, dtype=jnp.float32):
    # torch.nn.init.xavier_normal_ on a (fan_out, fan_in) weight; return JAX layout.
    std = math.sqrt(2.0 / (fan_in + fan_out))
    return (std * jax.random.normal(key, (fan_out, fan_in), dtype)).T


if __name__ == "__main__":
    B, S, D, F = 2, 8, 32, 64   # batch, seq, d_model, d_ff (small demo shapes)
    key = jax.random.PRNGKey(0)
    kx, k0, k1, k2, k3 = jax.random.split(key, 5)

    hidden_states = jax.random.normal(kx, (B, S, D), jnp.float32)

    # --- gated-gelu path ---
    params_gg = {
        "layer_norm_weight": jnp.ones((D,), jnp.float32),  # T5LayerNorm init = ones
        "wi_0": _xavier_normal(k0, F, D),                  # [D, F]
        "wi_1": _xavier_normal(k1, F, D),                  # [D, F]
        "wo":   _xavier_normal(k2, D, F),                  # [F, D]
    }
    prepared_gg = prepare_t5_ff_params(params_gg, feed_forward_proj="gated-gelu")
    out = t5_layer_ff_prepared(hidden_states, prepared_gg, layer_norm_epsilon=1e-6)
    out = jax.block_until_ready(out)
    assert out.shape == (B, S, D)

    x2d = hidden_states.reshape(-1, D)
    ref_bf16 = _ref_t5_layer_ff(x2d, params_gg, feed_forward_proj="gated-gelu",
                                matmul_dtype=jnp.bfloat16).reshape(B, S, D)
    ref_f32 = _ref_t5_layer_ff(x2d, params_gg, feed_forward_proj="gated-gelu",
                               matmul_dtype=jnp.float32).reshape(B, S, D)
    assert jnp.allclose(out, ref_bf16, atol=5e-3, rtol=5e-3), "gated-gelu mismatch (bf16 ref)"
    assert jnp.allclose(out, ref_f32, atol=1.5e-1, rtol=1.5e-1), "gated-gelu drift vs f32 ref"

    # --- relu path ---
    params_relu = {
        "layer_norm_weight": jnp.ones((D,), jnp.float32),
        "wi": _xavier_normal(k3, F, D),                    # [D, F]
        "wo": params_gg["wo"],                             # [F, D]
    }
    prepared_relu = prepare_t5_ff_params(params_relu, feed_forward_proj="relu")
    out_r = t5_layer_ff_prepared(hidden_states, prepared_relu, layer_norm_epsilon=1e-6)
    out_r = jax.block_until_ready(out_r)
    ref_r = _ref_t5_layer_ff(x2d, params_relu, feed_forward_proj="relu",
                             matmul_dtype=jnp.bfloat16).reshape(B, S, D)
    assert jnp.allclose(out_r, ref_r, atol=5e-3, rtol=5e-3), "relu mismatch (bf16 ref)"

    print("KERNEL_OK")
</pallas_src>

<mosaic_0001>
module attributes {stable_mosaic.version = 11 : i64} {
  func.func @_t5_ff_gated_gelu_kernel(%arg0: i32, %arg1: i32, %arg2: memref<16x32xf32, #tpu.memory_space<vmem>>, %arg3: memref<1x32xf32, #tpu.memory_space<vmem>>, %arg4: memref<1x32x128xbf16, #tpu.memory_space<vmem>>, %arg5: memref<64x32xbf16, #tpu.memory_space<vmem>>, %arg6: memref<16x32xf32, #tpu.memory_space<vmem>>, %arg7: memref<16x32xbf16, #tpu.memory_space<vmem>>, %arg8: memref<16x32xf32, #tpu.memory_space<vmem>>) attributes {dimension_semantics = [#tpu.dimension_semantics<parallel>, #tpu.dimension_semantics<arbitrary>], iteration_bounds = array<i64: 1, 1>, scalar_prefetch = 0 : i64, scratch_operands = 2 : i64, tpu.core_type = #tpu.core_type<tc>, window_params = [{transform_indices = @transform_0, window_bounds = array<i64: 16, 32>}, {pipeline_mode = #tpu.pipeline_mode<synchronous>, transform_indices = @transform_1, window_bounds = array<i64: 1, 32>}, {transform_indices = @transform_2, window_bounds = array<i64: 1, 32, 128>}, {transform_indices = @transform_3, window_bounds = array<i64: 64, 32>}, {transform_indices = @transform_4, window_bounds = array<i64: 16, 32>}]} {
    %c0_i32 = arith.constant 0 : i32
    %0 = arith.cmpi eq, %arg1, %c0_i32 : i32
    %1 = arith.extui %0 : i1 to i32
    %c0_i32_0 = arith.constant 0 : i32
    %2 = arith.cmpi ne, %1, %c0_i32_0 : i32
    scf.if %2 {
      %c0_18 = arith.constant 0 : index
      %c0_19 = arith.constant 0 : index
      %32 = vector.load %arg2[%c0_18, %c0_19] : memref<16x32xf32, #tpu.memory_space<vmem>>, vector<16x32xf32>
      %33 = arith.mulf %32, %32 : vector<16x32xf32>
      %cst_20 = arith.constant dense<0.000000e+00> : vector<16xf32>
      %34 = vector.multi_reduction <add>, %33, %cst_20 [1] : vector<16x32xf32> to vector<16xf32>
      %35 = vector.shape_cast %34 : vector<16xf32> to vector<16x1xf32>
      %cst_21 = arith.constant 3.200000e+01 : f32
      %36 = vector.broadcast %cst_21 : f32 to vector<16x1xf32>
      %37 = arith.divf %35, %36 : vector<16x1xf32>
      %c0_22 = arith.constant 0 : index
      %c0_23 = arith.constant 0 : index
      %38 = vector.load %arg3[%c0_22, %c0_23] : memref<1x32xf32, #tpu.memory_space<vmem>>, vector<1x32xf32>
      %cst_24 = arith.constant 9.99999997E-7 : f32
      %39 = vector.broadcast %cst_24 : f32 to vector<16x1xf32>
      %40 = arith.addf %37, %39 : vector<16x1xf32>
      %41 = math.rsqrt %40 : vector<16x1xf32>
      %42 = vector.broadcast %41 : vector<16x1xf32> to vector<16x32xf32>
      %43 = arith.mulf %32, %42 : vector<16x32xf32>
      %44 = vector.broadcast %38 : vector<1x32xf32> to vector<16x32xf32>
      %45 = arith.mulf %44, %43 : vector<16x32xf32>
      %46 = arith.truncf %45 : vector<16x32xf32> to vector<16x32xbf16>
      %c0_25 = arith.constant 0 : index
      %c0_26 = arith.constant 0 : index
      %47 = vector.load %arg7[%c0_25, %c0_26] : memref<16x32xbf16, #tpu.memory_space<vmem>>, vector<16x32xbf16>
      tpu.vector_store %arg7[%c0_25, %c0_26], %46 {strides = array<i32>} : memref<16x32xbf16, #tpu.memory_space<vmem>>, vector<16x32xbf16>,
      %c0_27 = arith.constant 0 : index
      %c0_28 = arith.constant 0 : index
      %48 = vector.load %arg8[%c0_27, %c0_28] : memref<16x32xf32, #tpu.memory_space<vmem>>, vector<16x32xf32>
      tpu.vector_store %arg8[%c0_27, %c0_28], %32 {strides = array<i32>} : memref<16x32xf32, #tpu.memory_space<vmem>>, vector<16x32xf32>,
    } else {
    }
    %c0 = arith.constant 0 : index
    %c0_1 = arith.constant 0 : index
    %3 = vector.load %arg7[%c0, %c0_1] : memref<16x32xbf16, #tpu.memory_space<vmem>>, vector<16x32xbf16>
    %c0_2 = arith.constant 0 : index
    %c0_3 = arith.constant 0 : index
    %c0_4 = arith.constant 0 : index
    %4 = vector.load %arg4[%c0_2, %c0_3, %c0_4] : memref<1x32x128xbf16, #tpu.memory_space<vmem>>, vector<1x32x128xbf16>
    %5 = vector.shape_cast %4 : vector<1x32x128xbf16> to vector<32x128xbf16>
    %cst = arith.constant dense<0.000000e+00> : vector<16x128xf32>
    %6 = tpu.matmul %3, %5, %cst {dimension_numbers = #tpu.dot_dimension_numbers<[1], [0], [0], [1], [0, 0, 1, 1], [], []>} : vector<16x32xbf16>, vector<32x128xbf16>, vector<16x128xf32> -> vector<16x128xf32>
    %7 = vector.extract_strided_slice %6 {offsets = [0, 0], sizes = [16, 64], strides = [1, 1]} : vector<16x128xf32> to vector<16x64xf32>
    %cst_5 = arith.constant 5.000000e-01 : f32
    %8 = vector.broadcast %cst_5 : f32 to vector<16x64xf32>
    %9 = arith.mulf %8, %7 : vector<16x64xf32>
    %cst_6 = arith.constant 4.471500e-02 : f32
    %10 = vector.broadcast %cst_6 : f32 to vector<16x64xf32>
    %11 = arith.mulf %10, %7 : vector<16x64xf32>
    %12 = arith.mulf %11, %7 : vector<16x64xf32>
    %13 = arith.mulf %12, %7 : vector<16x64xf32>
    %14 = arith.addf %7, %13 : vector<16x64xf32>
    %cst_7 = arith.constant 0.797884583 : f32
    %15 = vector.broadcast %cst_7 : f32 to vector<16x64xf32>
    %16 = arith.mulf %15, %14 : vector<16x64xf32>
    %17 = math.tanh %16 : vector<16x64xf32>
    %cst_8 = arith.constant 1.000000e+00 : f32
    %18 = vector.broadcast %cst_8 : f32 to vector<16x64xf32>
    %19 = arith.addf %18, %17 : vector<16x64xf32>
    %20 = arith.mulf %9, %19 : vector<16x64xf32>
    %21 = vector.extract_strided_slice %6 {offsets = [0, 64], sizes = [16, 64], strides = [1, 1]} : vector<16x128xf32> to vector<16x64xf32>
    %22 = arith.mulf %20, %21 : vector<16x64xf32>
    %23 = arith.truncf %22 : vector<16x64xf32> to vector<16x64xbf16>
    %c0_9 = arith.constant 0 : index
    %c0_10 = arith.constant 0 : index
    %24 = vector.load %arg8[%c0_9, %c0_10] : memref<16x32xf32, #tpu.memory_space<vmem>>, vector<16x32xf32>
    %c0_11 = arith.constant 0 : index
    %c0_12 = arith.constant 0 : index
    %25 = vector.load %arg5[%c0_11, %c0_12] : memref<64x32xbf16, #tpu.memory_space<vmem>>, vector<64x32xbf16>
    %cst_13 = arith.constant dense<0.000000e+00> : vector<16x32xf32>
    %26 = tpu.matmul %23, %25, %cst_13 {dimension_numbers = #tpu.dot_dimension_numbers<[1], [0], [0], [1], [0, 0, 1, 1], [], []>} : vector<16x64xbf16>, vector<64x32xbf16>, vector<16x32xf32> -> vector<16x32xf32>
    %27 = arith.addf %24, %26 : vector<16x32xf32>
    %c0_14 = arith.constant 0 : index
    %c0_15 = arith.constant 0 : index
    %28 = vector.load %arg8[%c0_14, %c0_15] : memref<16x32xf32, #tpu.memory_space<vmem>>, vector<16x32xf32>
    tpu.vector_store %arg8[%c0_14, %c0_15], %27 {strides = array<i32>} : memref<16x32xf32, #tpu.memory_space<vmem>>, vector<16x32xf32>,
    %c0_i32_16 = arith.constant 0 : i32
    %29 = arith.cmpi eq, %arg1, %c0_i32_16 : i32
    %30 = arith.extui %29 : i1 to i32
    %c0_i32_17 = arith.constant 0 : i32
    %31 = arith.cmpi ne, %30, %c0_i32_17 : i32
    scf.if %31 {
      %c0_18 = arith.constant 0 : index
      %c0_19 = arith.constant 0 : index
      %32 = vector.load %arg8[%c0_18, %c0_19] : memref<16x32xf32, #tpu.memory_space<vmem>>, vector<16x32xf32>
      %c0_20 = arith.constant 0 : index
      %c0_21 = arith.constant 0 : index
      %33 = vector.load %arg6[%c0_20, %c0_21] : memref<16x32xf32, #tpu.memory_space<vmem>>, vector<16x32xf32>
      tpu.vector_store %arg6[%c0_20, %c0_21], %32 {strides = array<i32>} : memref<16x32xf32, #tpu.memory_space<vmem>>, vector<16x32xf32>,
    } else {
    }
    return
  }
  func.func @transform_0(%arg0: i32, %arg1: i32) -> (i32, i32) {
    %c0_i32 = arith.constant 0 : i32
    %c0_i32_0 = arith.constant 0 : i32
    return %arg0, %c0_i32 : i32, i32
  }
  func.func @transform_1(%arg0: i32, %arg1: i32) -> (i32, i32) {
    %c0_i32 = arith.constant 0 : i32
    %c0_i32_0 = arith.constant 0 : i32
    %c0_i32_1 = arith.constant 0 : i32
    return %c0_i32, %c0_i32_0 : i32, i32
  }
  func.func @transform_2(%arg0: i32, %arg1: i32) -> (i32, i32, i32) {
    %c0_i32 = arith.constant 0 : i32
    %c0_i32_0 = arith.constant 0 : i32
    %c0_i32_1 = arith.constant 0 : i32
    return %arg1, %c0_i32, %c0_i32_0 : i32, i32, i32
  }
  func.func @transform_3(%arg0: i32, %arg1: i32) -> (i32, i32) {
    %c0_i32 = arith.constant 0 : i32
    %c0_i32_0 = arith.constant 0 : i32
    return %arg1, %c0_i32 : i32, i32
  }
  func.func @transform_4(%arg0: i32, %arg1: i32) -> (i32, i32) {
    %c0_i32 = arith.constant 0 : i32
    %c0_i32_0 = arith.constant 0 : i32
    return %arg0, %c0_i32 : i32, i32
  }
}

</mosaic_0001>

<bundles_post_ra>
// kernel: tpu_custom_call.1
= control target key start
LH: loop header
LB: loop body
LE: loop exit
PB: predicated region body
PF: predicated region fallthrough
CT: control target
= control target key end

     0   :  { %vm27_vm0 = vcmask 261120   ;;  %s414_s0 = inlined_call_operand.vmem [shape: f32[16,32], index: 0, kind: input, shape index: {}]   ;;  %s415_s1 = inlined_call_operand.vmem [shape: f32[1,32], index: 1, kind: input, shape index: {}]   ;;  %s416_s2 = inlined_call_operand.vmem [shape: bf16[1,32,128], index: 2, kind: input, shape index: {}]   ;;  %s417_s3 = inlined_call_operand.vmem [shape: bf16[64,32], index: 3, kind: input, shape index: {}]   ;;  %s418_s4 = inlined_call_operand.hbm [shape: f32[16,32], index: 4, kind: output, shape index: {}]  }
   0x1   :  { %v23_v0 = vld [vmem:[%s414_s0] sm:$0xff]  ;;  %v24_v1 = vld [vmem:[%s414_s0 + $0x8] sm:$0xff] }
   0x2   :  { %v25_v2 = vmul.f32 %v23_v0, %v23_v0  ;;  %54 = vst.msk [vmem:[#allocation3] sm:$0xff] %vm27_vm0, %v23_v0  ;;  %v26_v3 = vmul.f32 %v24_v1, %v24_v1  ;;  %55 = vst.msk [vmem:[#allocation3 + $0x8] sm:$0xff] %vm27_vm0, %v24_v1 }
   0x4   :  { %v28_v4 = vsel %vm27_vm0, %v25_v2, 0.0  ;;  %v31_v5 = vsel %vm27_vm0, %v26_v3, 0.0 }
   0x5   :  { %29 = vadd.xlane.f32.xlu0 %v28_v4 }
   0x6   :  { %9 = vsyncpa [#allocation5], 0  ;;  %v296_v6 = vld [vmem:[%s416_s2] sm:$0xff]   ;;  %v334_v7 = vmov 0.0   ;;  %v297_v8 = vld [vmem:[%s416_s2 + $0x8] sm:$0xff]   ;;  %vm335_vm1 = vmmov 0  }
   0x7   :  { %270 = vmatprep.subr.bf16.mxu0 %v334_v7  ;;  %278 = vmatprep.subr.bf16.mxu1 %v334_v7  ;;  %v253_v18 = vld [vmem:[%s415_s1] ss:$0 sm:$0xff]  ;;  %v299_v25 = vld [vmem:[%s417_s3 + $0x8] sm:$0xff]   ;;  %v300_v26 = vld [vmem:[%s417_s3 + $0x10] sm:$0xff]   ;;  %s336_s30 = smov 64   ;;  %vm181_vm2 = vcmask 523264  }
   0x8   :  { %271 = vmatpush3.bf16.msra.mxu0 %v296_v6  ;;  %274 = vmatprep.mubr.msk.bf16.mxu0 %vm335_vm1, %v334_v7  ;;  %v298_v24 = vld [vmem:[%s417_s3] sm:$0xff]   ;;  %v301_v27 = vld [vmem:[%s417_s3 + $0x18] sm:$0xff]   ;;  %s337_s3 = smov [#allocation4]  }
   0x9   :  { %32 = vadd.xlane.f32.xlu0 %v31_v5  ;;  %272 = vmatprep.subr.bf16.mxu0 %v334_v7  ;;  %v147_v55 = vld [vmem:[#allocation3] sm:$0xff]  ;;  %v148_v57 = vld [vmem:[#allocation3 + $0x8] sm:$0xff]  ;;  %s242_s5 = sshll.u32 %s337_s3, 4  ;;  %s243_s5 = int_to_ptr.vmem [resolvable:$true] %s242_s5 }
   0xa   :  { %286 = vmatprep.mubr.msk.bf16.mxu1 %vm335_vm1, %v334_v7  ;;  %279 = vmatpush3.bf16.msra.mxu1 %v298_v24  ;;  %s310_s6 = scalar_lea.vmem %s243_s5, 256  ;;  %p315_p1 = scmp.lt.s32.totalorder %s243_s5, %s243_s5 }
   0xb   :  { %280 = vmatprep.subr.bf16.mxu1 %v334_v7  ;;  %p311_p0 = scmp.ne.s32.totalorder %s243_s5, %s310_s6  ;;  %p316_p2 = scmp.lt.s32.totalorder %s310_s6, %s310_s6 }
   0xc   :  { %273 = vmatpush3.bf16.msra.mxu0 %v297_v8 }
   0xd   :  { %p317_p3 = por %p316_p2, %p315_p1 }
   0xe   :  { %281 = vmatpush3.bf16.msra.mxu1 %v299_v25 }
   0xf   :  { %282 = vmatprep.subr.bf16.mxu1 %v334_v7  ;;  %p318_p4 = pnand %p317_p3, %p311_p0 }
  0x12   :  { %283 = vmatpush3.bf16.msra.mxu1 %v300_v26 }
  0x13   :  { %284 = vmatprep.subr.bf16.mxu1 %v334_v7 }
  0x16   :  { %285 = vmatpush3.bf16.msra.mxu1 %v301_v27 }
  0x92   :  { %v30_v9 = vpop.xlane.xlu0 %29 }
  0x93   :  { %v35_v10 = vmul.f32 0.03125, %v30_v9 }
  0x95   :  { %v38_v11 = vadd.f32 1e-06, %v35_v10 }
  0x96   :  { %v33_v12 = vpop.xlane.xlu0 %32 }
  0x97   :  { %302 = vrsqrt.f32 %v38_v11  ;;  %v36_v13 = vmul.f32 0.03125, %v33_v12 }
  0x99   :  { %v39_v14 = vadd.f32 1e-06, %v36_v13 }
  0x9b   :  { %304 = vrsqrt.f32 %v39_v14 }
  0xa1   :  { %v303_v15 = vpop.eup %302 }
  0xa2   :  { %v42_v16 = vmul.f32 %v303_v15, %v23_v0 }
  0xa4   :  { %v50_v20 = vmul.f32 %v253_v18, %v42_v16 }
  0xa5   :  { %v305_v17 = vpop.eup %304 }
  0xa6   :  { %v43_v19 = vmul.f32 %v305_v17, %v24_v1 }
  0xa8   :  { %v51_v21 = vmul.f32 %v253_v18, %v43_v19 }
  0xaa   :  { %v52_v22 = vpack.c.bf16 %v51_v21, %v50_v20 }
  0xac   :  { %53 = vst.msk [vmem:[#allocation2] sm:$0xff] %vm27_vm0, %v52_v22 }
  0xb3   :  { %v56_v23 = vld [vmem:[#allocation2] sm:$0xff] }
  0xb4   :  { %275 = vmatmul.mubr.msk.bf16.vlgmr.msra.gmra.mrb[0].mxu0 %vm27_vm0, %v56_v23 }
 0x187   :  { %v111_v28 = vpop.f32.mrb[0].mxu0 }
 0x188   :  { %138 = vrot.lane.b32.xlu1 %v111_v28, %s336_s30  ;;  %v276_v29 = vpop.f32.mrb[1].mxu0  ;;  %v120_v32 = vmul.f32 0.044715, %v111_v28  ;;  %v118_v47 = vmul.f32 0.5, %v111_v28 }
 0x189   :  { %v114_v30 = vpop.f32.mrb[2].mxu0 }
 0x18a   :  { %v277_v31 = vpop.f32.mrb[3].mxu0  ;;  %v121_v33 = vmul.f32 0.044715, %v114_v30  ;;  %v122_v34 = vmul.f32 %v120_v32, %v111_v28  ;;  %v119_v48 = vmul.f32 0.5, %v114_v30 }
 0x18c   :  { %140 = vrot.lane.b32.xlu1 %v114_v30, %s336_s30  ;;  %v123_v35 = vmul.f32 %v121_v33, %v114_v30  ;;  %v124_v36 = vmul.f32 %v122_v34, %v111_v28 }
 0x18e   :  { %v125_v37 = vmul.f32 %v123_v35, %v114_v30  ;;  %v126_v38 = vadd.f32 %v124_v36, %v111_v28 }
 0x190   :  { %v127_v39 = vadd.f32 %v125_v37, %v114_v30  ;;  %v128_v40 = vmul.f32 0.7978846, %v126_v38 }
 0x192   :  { %v129_v41 = vmul.f32 0.7978846, %v127_v39  ;;  %306 = vtanh.f32 %v128_v40 }
 0x194   :  { %308 = vtanh.f32 %v129_v41 }
 0x19c   :  { %v307_v42 = vpop.eup %306 }
 0x19d   :  { %v132_v44 = vadd.f32 1.0, %v307_v42 }
 0x19e   :  { %v309_v43 = vpop.eup %308 }
 0x19f   :  { %v133_v45 = vadd.f32 1.0, %v309_v43  ;;  %v134_v49 = vmul.f32 %v132_v44, %v118_v47 }
 0x1a1   :  { %v135_v50 = vmul.f32 %v133_v45, %v119_v48 }
 0x1fa   :  { %v139_v46 = vpop.permute.xlu1 %138 }
 0x1fb   :  { %v144_v52 = vmul.f32 %v139_v46, %v134_v49 }
 0x1fe   :  { %v141_v51 = vpop.permute.xlu1 %140 }
 0x1ff   :  { %v145_v53 = vmul.f32 %v141_v51, %v135_v50 }
 0x201   :  { %v146_v54 = vpack.c.bf16 %v145_v53, %v144_v52 }
 0x203   :  { %287 = vmatmul.mubr.msk.bf16.vlgmr.msra.gmra.mrb[0].mxu1 %vm181_vm2, %v146_v54 }
 0x2d6   :  { %v219_v56 = vpop.f32.mrb[0].mxu1 }
 0x2d7   :  { %v226_v58 = vadd.f32 %v219_v56, %v147_v55  ;;  %v288_v59 = vpop.f32.mrb[1].mxu1 }
 0x2d8   :  { %v222_v60 = vpop.f32.mrb[2].mxu1 }
 0x2d9   :  { %228 = vst.msk [vmem:[#allocation3] sm:$0xff] %vm27_vm0, %v226_v58  ;;  %v227_v61 = vadd.f32 %v222_v60, %v148_v57  ;;  %v289_v62 = vpop.f32.mrb[3].mxu1 }
 0x2db   :  { %229 = vst.msk [vmem:[#allocation3 + $0x8] sm:$0xff] %vm27_vm0, %v227_v61 }
 0x2e0   :  { %v233_v63 = vld [vmem:[#allocation3] sm:$0xff] }
 0x2e1   :  { %235 = vst.msk [vmem:[#allocation4] sm:$0xff] %vm27_vm0, %v233_v63 }
 0x2e2   :  { %v234_v0 = vld [vmem:[#allocation3 + $0x8] sm:$0xff] }
 0x2e3   :  { %236 = vst.msk [vmem:[#allocation4 + $0x8] sm:$0xff] %vm27_vm0, %v234_v0 }
 0x2e4   :  { %321 = shalt.err (!%p318_p4)
}
 0x2e5   :  { %s322_s9 = scalar_lea.hbm %s418_s4, 256 }
 0x2e6   :  { %p323_p5 = scmp.ne.s32.totalorder %s418_s4, %s322_s9  ;;  %p326_p6 = scmp.lt.u32.totalorder %s322_s9, %s418_s4 }
 0x2e8   :  { %p328_p7 = pnand %p326_p6, %p323_p5 }
 0x2ea   :  { %331 = shalt.err (!%p328_p7)
}
 0x2eb   :  { %s338_s14 = smov 128   ;;  %s339_s15 = smov 8  }
 0x2ec   :  { %248 = dma.vmem_to_hbm [thread:$0]  %s243_s5, 256, %s418_s4, [#allocation5], %s338_s14, %s338_s14, %s339_s15  }
 0x2ed   :  { %332 = dma.done.wait [#allocation5], 256  }
 0x2ee   :  { %333 = vsyncadd [#allocation5], 4294967040 }
 0x2ef   :  { %252 = vsyncpa [#allocation5], 1 }

</bundles_post_ra>
